<compile_context>
chip_gen: v7x
topology: tpu7x:2x2x1
jax: 0.10.0
libtpu: 0.0.40
codegen_flags: <defaults>
</compile_context>

<pallas_src>
import jax
import jax.numpy as jnp
from jax.experimental import pallas as pl
from jax.experimental.pallas import tpu as pltpu

_NEG = -1e30  # f32 bias for padded class columns -> exp(logit - max) == 0 exactly


# --------------------------------------------------------------------------------------
# Kernels
# --------------------------------------------------------------------------------------
def _softmax_store(logits, o_ref):
    """Row softmax in f32 -> o_ref.  Reciprocal lowers to the EUP vrcp slot."""
    m = jnp.max(logits, axis=-1, keepdims=True)
    e = jnp.exp(logits - m)
    denom = jnp.sum(e, axis=-1, keepdims=True)
    o_ref[...] = (e * pl.reciprocal(denom, approx=True)).astype(o_ref.dtype)


def _head_kernel(x_ref, w1_ref, b1_ref, w2_ref, b2_ref, o_ref):
    # fc1: cast x -> bf16 on the VPU (x arrives in its native dtype, no wrapper copy),
    # MXU matmul with f32 accumulation; bias + ReLU in f32.
    h = jnp.dot(x_ref[...].astype(jnp.bfloat16), w1_ref[...],
                preferred_element_type=jnp.float32)
    h = jnp.maximum(h + b1_ref[...], 0.0)
    # fc2: bf16 MXU operands again; padded class columns carry a -1e30 f32 bias.
    logits = jnp.dot(h.astype(jnp.bfloat16), w2_ref[...],
                     preferred_element_type=jnp.float32) + b2_ref[...]
    _softmax_store(logits, o_ref)


def _head_kernel_ktiled(x_ref, w1_ref, b1_ref, w2_ref, b2_ref, o_ref, h_acc):
    # Fallback for heads whose resident bf16 weights don't fit the per-core VMEM budget
    # (mainly v7x, 64 MiB/TC): tile the fc1 contraction along K, accumulate h in f32.
    k = pl.program_id(1)

    @pl.when(k == 0)
    def _init():
        h_acc[...] = jnp.zeros_like(h_acc)

    h_acc[...] += jnp.dot(x_ref[...].astype(jnp.bfloat16), w1_ref[...],
                          preferred_element_type=jnp.float32)

    @pl.when(k == pl.num_programs(1) - 1)
    def _finalize():
        h = jnp.maximum(h_acc[...] + b1_ref[...], 0.0)
        logits = jnp.dot(h.astype(jnp.bfloat16), w2_ref[...],
                         preferred_element_type=jnp.float32) + b2_ref[...]
        _softmax_store(logits, o_ref)


# --------------------------------------------------------------------------------------
# One-time parameter preparation (hoisted out of the per-call path)
# --------------------------------------------------------------------------------------
def prepare_params(w1, b1, w2, b2):
    """Cast weights to bf16 and zero-pad the class dim to a lane-dense multiple of 128.
    Call once; reuse the result across steps (this is pure layout work)."""
    in_size, emb_dim = w1.shape
    out_size = w2.shape[1]
    out_pad = max(128, ((out_size + 127) // 128) * 128)
    w1_bf = w1.astype(jnp.bfloat16)
    w2_bf = (jnp.zeros((emb_dim, out_pad), jnp.bfloat16)
             .at[:, :out_size].set(w2.astype(jnp.bfloat16)))
    b1_f = b1.astype(jnp.float32).reshape(1, emb_dim)
    # NOTE: b2 must stay f32 end-to-end -- the -1e30 pad bias would saturate to -inf in
    # bf16 (latent NaN risk).  In f32, padded columns give exp(logit - max) == 0 exactly.
    b2_f = (jnp.full((1, out_pad), _NEG, jnp.float32)
            .at[0, :out_size].set(b2.astype(jnp.float32)))
    return {"w1": w1_bf, "b1": b1_f, "w2": w2_bf, "b2": b2_f,
            "in_size": in_size, "emb_dim": emb_dim,
            "out_size": out_size, "out_pad": out_pad}


# --------------------------------------------------------------------------------------
# Sizing heuristics (generation-aware via get_tpu_info, conservative fallback)
# --------------------------------------------------------------------------------------
def _vmem_budget():
    """Per-core VMEM budget with headroom for compiler scratch / unaccounted temporaries."""
    try:
        cap = int(pltpu.get_tpu_info().vmem_capacity_bytes)
    except Exception:
        cap = 64 << 20  # assume the tightest generation (v7x: 64 MiB per TensorCore)
    return cap * 3 // 4


def _fixed_bytes(w1_rows, emb_dim, out_pad, k_tiled):
    w1_bufs = 2 if k_tiled else 1  # a K-sliced W1 is pipelined => double-buffered
    return (w1_bufs * w1_rows * emb_dim * 2      # W1 (bf16)
            + emb_dim * out_pad * 2              # W2 resident (bf16)
            + (emb_dim + out_pad) * 4)           # biases (f32)


def _per_row_bytes(x_cols, emb_dim, out_pad, x_itemsize):
    stream = 2 * x_cols * x_itemsize + 2 * out_pad * 4   # dbl-buffered x tile + f32 out tile
    interm = emb_dim * (4 + 2) + out_pad * (4 + 4)       # h f32 + h bf16, logits + exp
    return stream + interm


def _pick_k_tiles(in_size, emb_dim, out_pad, x_itemsize, budget):
    """Smallest number of 128-aligned fc1 K tiles whose working set fits the budget."""
    for kt in range(2, max(in_size // 128, 2) + 1):
        if in_size % kt:
            continue
        tk = in_size // kt
        if tk % 128:
            continue
        need = (_fixed_bytes(tk, emb_dim, out_pad, k_tiled=True)
                + 8 * _per_row_bytes(tk, emb_dim, out_pad, x_itemsize))
        if need <= budget:
            return kt
    return max(in_size // 128, 1)  # last resort: 128-wide K slices


def _pick_tb(B, max_rows):
    """MXU- and VMEM-aware batch tile.

    Largest multiple of 8 that divides B and fits max_rows, preferring
      (a) >=2 grid programs once tiles are >=128 rows (keeps both v7x TensorCores busy
          without splitting tiny fully-resident problems; on single-TC chips the extra
          grid step is ~0.35 us, i.e. noise),
      (b) MXU-aligned sizes (256 > 128 > 64 > ...),
      (c) the largest such tile (capped at 1024 rows; diminishing returns beyond).
    """
    max_rows = int(max(8, min(max_rows, B, 1024)))
    cands = [t for t in range(8, max_rows + 1, 8) if B % t == 0]
    if not cands:
        # Tiny / irregular batch: one full-batch block (block dim == array dim is legal).
        return B

    def align(t):
        for a in (256, 128, 64, 32, 16, 8):
            if t % a == 0:
                return a
        return 1

    multi = [t for t in cands if t >= 128 and B // t >= 2]
    pool = multi if multi else cands
    return max(pool, key=lambda t: (align(t), t))


# --------------------------------------------------------------------------------------
# Wrapper
# --------------------------------------------------------------------------------------
def prediction_head(x, params, *, tb=None, k_tiles=None):
    """x: (B, input_size), any float dtype; params: dict from prepare_params().
    Returns f32 (B, output_size) softmax probabilities (matches the PyTorch forward)."""
    B, in_size = x.shape
    assert in_size == params["in_size"]
    emb_dim = params["emb_dim"]
    out_size = params["out_size"]
    out_pad = params["out_pad"]
    w1, b1, w2, b2 = params["w1"], params["b1"], params["w2"], params["b2"]
    xb = x.dtype.itemsize
    budget = _vmem_budget()

    # K-tiling fallback: only when the fully-resident working set would blow the budget.
    if k_tiles is None:
        need_full = (_fixed_bytes(in_size, emb_dim, out_pad, k_tiled=False)
                     + 8 * _per_row_bytes(in_size, emb_dim, out_pad, xb))
        k_tiles = 1 if need_full <= budget else _pick_k_tiles(
            in_size, emb_dim, out_pad, xb, budget)
    k_tiled = k_tiles > 1
    if k_tiled:
        assert in_size % k_tiles == 0, "k_tiles must divide input_size"
    tk = in_size // k_tiles
    if k_tiled:
        assert tk % 128 == 0, "fc1 K tile must be a multiple of 128 lanes"

    fixed = _fixed_bytes(tk, emb_dim, out_pad, k_tiled)
    per_row = _per_row_bytes(tk, emb_dim, out_pad, xb)
    if tb is None:
        tb = _pick_tb(B, (budget - fixed) // per_row)
    assert B % tb == 0, "batch must be divisible by the row tile"

    vmem_limit = int(min(budget, max(32 << 20, (fixed + tb * per_row) * 3 // 2)))
    cost = pl.CostEstimate(
        flops=2 * B * (in_size * emb_dim + emb_dim * out_pad),
        transcendentals=B * out_pad,
        bytes_accessed=(x.size * xb + w1.size * 2 + w2.size * 2
                        + b1.size * 4 + b2.size * 4 + B * out_pad * 4),
    )
    resident = pl.Buffered(1)  # constant blocks: single-buffered (saves VMEM)

    if not k_tiled:
        out_padded = pl.pallas_call(
            _head_kernel,
            out_shape=jax.ShapeDtypeStruct((B, out_pad), jnp.float32),
            grid_spec=pltpu.PrefetchScalarGridSpec(
                num_scalar_prefetch=0,
                grid=(B // tb,),
                in_specs=[
                    pl.BlockSpec((tb, in_size), lambda i: (i, 0)),               # x (pipelined)
                    pl.BlockSpec((in_size, emb_dim), lambda i: (0, 0),
                                 pipeline_mode=resident),                        # W1 resident
                    pl.BlockSpec((1, emb_dim), lambda i: (0, 0),
                                 pipeline_mode=resident),                        # b1 resident
                    pl.BlockSpec((emb_dim, out_pad), lambda i: (0, 0),
                                 pipeline_mode=resident),                        # W2 resident
                    pl.BlockSpec((1, out_pad), lambda i: (0, 0),
                                 pipeline_mode=resident),                        # b2 resident
                ],
                out_specs=pl.BlockSpec((tb, out_pad), lambda i: (i, 0)),
            ),
            compiler_params=pltpu.CompilerParams(
                # TODO(synk): switch the batch axis to pltpu.CORE_PARALLEL if "parallel"
                # does not shard it across v7x's two TensorCores in your toolchain.
                dimension_semantics=("parallel",),
                vmem_limit_bytes=vmem_limit,
            ),
            cost_estimate=cost,
        )(x, w1, b1, w2, b2)
    else:
        out_padded = pl.pallas_call(
            _head_kernel_ktiled,
            out_shape=jax.ShapeDtypeStruct((B, out_pad), jnp.float32),
            grid_spec=pltpu.PrefetchScalarGridSpec(
                num_scalar_prefetch=0,
                grid=(B // tb, k_tiles),
                in_specs=[
                    pl.BlockSpec((tb, tk), lambda i, k: (i, k)),                 # x K-slice
                    pl.BlockSpec((tk, emb_dim), lambda i, k: (k, 0)),            # W1 K-slice
                    pl.BlockSpec((1, emb_dim), lambda i, k: (0, 0),
                                 pipeline_mode=resident),                        # b1 resident
                    pl.BlockSpec((emb_dim, out_pad), lambda i, k: (0, 0),
                                 pipeline_mode=resident),                        # W2 resident
                    pl.BlockSpec((1, out_pad), lambda i, k: (0, 0),
                                 pipeline_mode=resident),                        # b2 resident
                ],
                out_specs=pl.BlockSpec((tb, out_pad), lambda i, k: (i, 0)),
                scratch_shapes=[pltpu.VMEM((tb, emb_dim), jnp.float32)],
            ),
            compiler_params=pltpu.CompilerParams(
                dimension_semantics=("parallel", "arbitrary"),
                vmem_limit_bytes=vmem_limit,
            ),
            cost_estimate=cost,
        )(x, w1, b1, w2, b2)

    # Cheap at small class counts; callers able to consume the padded slab may skip this.
    return out_padded[:, :out_size]


def reference(x, w1, b1, w2, b2):
    h = jnp.maximum(x @ w1 + b1, 0.0)
    logits = h @ w2 + b2
    return jax.nn.softmax(logits, axis=1)


# --------------------------------------------------------------------------------------
# Self-test
# --------------------------------------------------------------------------------------
if __name__ == "__main__":
    key = jax.random.PRNGKey(0)

    def make_inputs(key, B, in_size, emb_dim, out_size):
        kx, kw1, kb1, kw2, kb2 = jax.random.split(key, 5)
        s1 = 1.0 / (in_size ** 0.5)
        s2 = 1.0 / (emb_dim ** 0.5)
        x = jax.random.normal(kx, (B, in_size), jnp.float32)
        w1 = jax.random.uniform(kw1, (in_size, emb_dim), jnp.float32, -s1, s1)
        b1 = jax.random.uniform(kb1, (emb_dim,), jnp.float32, -s1, s1)
        w2 = jax.random.uniform(kw2, (emb_dim, out_size), jnp.float32, -s2, s2)
        b2 = jax.random.uniform(kb2, (out_size,), jnp.float32, -s2, s2)
        return x, w1, b1, w2, b2

    # --- primary test: resident-weight single-pass path ---------------------------------
    k1, k2 = jax.random.split(key)
    B, input_size, emb_dim, output_size = 256, 64, 256, 16
    x, w1, b1, w2, b2 = make_inputs(k1, B, input_size, emb_dim, output_size)
    params = prepare_params(w1, b1, w2, b2)          # one-time layout/precision prep
    out = jax.block_until_ready(prediction_head(x, params))
    ref = reference(x, w1, b1, w2, b2)
    assert out.shape == (B, output_size)
    # bf16 MXU operands -> compare against the f32 reference with a loose tolerance.
    assert jnp.allclose(out, ref, atol=2e-2, rtol=2e-2), "mismatch vs reference (main path)"
    # approx reciprocal (EUP) -> row sums are ~1 to roughly 1e-2.
    assert jnp.allclose(jnp.sum(out, axis=1), 1.0, atol=1e-2), "softmax rows must sum to ~1"

    # --- secondary test: K-tiled fallback path (forced at a small shape) ----------------
    B2, in2, emb2, out2 = 128, 256, 128, 10
    x2, w1_2, b1_2, w2_2, b2_2 = make_inputs(k2, B2, in2, emb2, out2)
    params2 = prepare_params(w1_2, b1_2, w2_2, b2_2)
    out_k = jax.block_until_ready(prediction_head(x2, params2, k_tiles=2))
    ref_k = reference(x2, w1_2, b1_2, w2_2, b2_2)
    assert out_k.shape == (B2, out2)
    assert jnp.allclose(out_k, ref_k, atol=2e-2, rtol=2e-2), "mismatch vs reference (K-tiled)"
    assert jnp.allclose(jnp.sum(out_k, axis=1), 1.0, atol=1e-2), "softmax rows must sum to ~1"

    print("KERNEL_OK")
</pallas_src>

<mosaic_0001>
module attributes {stable_mosaic.version = 11 : i64} {
  func.func @_head_kernel(%arg0: i32, %arg1: memref<128x64xf32, #tpu.memory_space<vmem>>, %arg2: memref<64x256xbf16, #tpu.memory_space<vmem>>, %arg3: memref<1x256xf32, #tpu.memory_space<vmem>>, %arg4: memref<256x128xbf16, #tpu.memory_space<vmem>>, %arg5: memref<1x128xf32, #tpu.memory_space<vmem>>, %arg6: memref<128x128xf32, #tpu.memory_space<vmem>>) attributes {dimension_semantics = [#tpu.dimension_semantics<parallel>], iteration_bounds = array<i64: 2>, scalar_prefetch = 0 : i64, scratch_operands = 0 : i64, tpu.core_type = #tpu.core_type<tc>, window_params = [{transform_indices = @transform_0, window_bounds = array<i64: 128, 64>}, {pipeline_mode = #tpu.pipeline_mode<synchronous>, transform_indices = @transform_1, window_bounds = array<i64: 64, 256>}, {pipeline_mode = #tpu.pipeline_mode<synchronous>, transform_indices = @transform_2, window_bounds = array<i64: 1, 256>}, {pipeline_mode = #tpu.pipeline_mode<synchronous>, transform_indices = @transform_3, window_bounds = array<i64: 256, 128>}, {pipeline_mode = #tpu.pipeline_mode<synchronous>, transform_indices = @transform_4, window_bounds = array<i64: 1, 128>}, {transform_indices = @transform_5, window_bounds = array<i64: 128, 128>}]} {
    %c0 = arith.constant 0 : index
    %c0_0 = arith.constant 0 : index
    %0 = vector.load %arg1[%c0, %c0_0] : memref<128x64xf32, #tpu.memory_space<vmem>>, vector<128x64xf32>
    %1 = arith.truncf %0 : vector<128x64xf32> to vector<128x64xbf16>
    %c0_1 = arith.constant 0 : index
    %c0_2 = arith.constant 0 : index
    %2 = vector.load %arg2[%c0_1, %c0_2] : memref<64x256xbf16, #tpu.memory_space<vmem>>, vector<64x256xbf16>
    %cst = arith.constant dense<0.000000e+00> : vector<128x256xf32>
    %3 = tpu.matmul %1, %2, %cst {dimension_numbers = #tpu.dot_dimension_numbers<[1], [0], [0], [1], [0, 0, 1, 1], [], []>} : vector<128x64xbf16>, vector<64x256xbf16>, vector<128x256xf32> -> vector<128x256xf32>
    %c0_3 = arith.constant 0 : index
    %c0_4 = arith.constant 0 : index
    %4 = vector.load %arg3[%c0_3, %c0_4] : memref<1x256xf32, #tpu.memory_space<vmem>>, vector<1x256xf32>
    %5 = vector.broadcast %4 : vector<1x256xf32> to vector<128x256xf32>
    %6 = arith.addf %3, %5 : vector<128x256xf32>
    %cst_5 = arith.constant 0.000000e+00 : f32
    %7 = vector.broadcast %cst_5 : f32 to vector<128x256xf32>
    %8 = arith.maximumf %6, %7 : vector<128x256xf32>
    %9 = arith.truncf %8 : vector<128x256xf32> to vector<128x256xbf16>
    %c0_6 = arith.constant 0 : index
    %c0_7 = arith.constant 0 : index
    %10 = vector.load %arg4[%c0_6, %c0_7] : memref<256x128xbf16, #tpu.memory_space<vmem>>, vector<256x128xbf16>
    %cst_8 = arith.constant dense<0.000000e+00> : vector<128x128xf32>
    %11 = tpu.matmul %9, %10, %cst_8 {dimension_numbers = #tpu.dot_dimension_numbers<[1], [0], [0], [1], [0, 0, 1, 1], [], []>} : vector<128x256xbf16>, vector<256x128xbf16>, vector<128x128xf32> -> vector<128x128xf32>
    %c0_9 = arith.constant 0 : index
    %c0_10 = arith.constant 0 : index
    %12 = vector.load %arg5[%c0_9, %c0_10] : memref<1x128xf32, #tpu.memory_space<vmem>>, vector<1x128xf32>
    %13 = vector.broadcast %12 : vector<1x128xf32> to vector<128x128xf32>
    %14 = arith.addf %11, %13 : vector<128x128xf32>
    %cst_11 = arith.constant dense<0xFF800000> : vector<128xf32>
    %15 = vector.multi_reduction <maximumf>, %14, %cst_11 [1] : vector<128x128xf32> to vector<128xf32>
    %16 = vector.shape_cast %15 : vector<128xf32> to vector<128x1xf32>
    %17 = vector.broadcast %16 : vector<128x1xf32> to vector<128x128xf32>
    %18 = arith.subf %14, %17 : vector<128x128xf32>
    %19 = math.exp %18 : vector<128x128xf32>
    %cst_12 = arith.constant dense<0.000000e+00> : vector<128xf32>
    %20 = vector.multi_reduction <add>, %19, %cst_12 [1] : vector<128x128xf32> to vector<128xf32>
    %21 = vector.shape_cast %20 : vector<128xf32> to vector<128x1xf32>
    %22 = tpu.reciprocal %21 {approx = true} : vector<128x1xf32> -> vector<128x1xf32>
    %23 = vector.broadcast %22 : vector<128x1xf32> to vector<128x128xf32>
    %24 = arith.mulf %19, %23 : vector<128x128xf32>
    %c0_13 = arith.constant 0 : index
    %c0_14 = arith.constant 0 : index
    %25 = vector.load %arg6[%c0_13, %c0_14] : memref<128x128xf32, #tpu.memory_space<vmem>>, vector<128x128xf32>
    tpu.vector_store %arg6[%c0_13, %c0_14], %24 {strides = array<i32>} : memref<128x128xf32, #tpu.memory_space<vmem>>, vector<128x128xf32>,
    return
  }
  func.func @transform_0(%arg0: i32) -> (i32, i32) {
    %c0_i32 = arith.constant 0 : i32
    %c0_i32_0 = arith.constant 0 : i32
    return %arg0, %c0_i32 : i32, i32
  }
  func.func @transform_1(%arg0: i32) -> (i32, i32) {
    %c0_i32 = arith.constant 0 : i32
    %c0_i32_0 = arith.constant 0 : i32
    %c0_i32_1 = arith.constant 0 : i32
    return %c0_i32, %c0_i32_0 : i32, i32
  }
  func.func @transform_2(%arg0: i32) -> (i32, i32) {
    %c0_i32 = arith.constant 0 : i32
    %c0_i32_0 = arith.constant 0 : i32
    %c0_i32_1 = arith.constant 0 : i32
    return %c0_i32, %c0_i32_0 : i32, i32
  }
  func.func @transform_3(%arg0: i32) -> (i32, i32) {
    %c0_i32 = arith.constant 0 : i32
    %c0_i32_0 = arith.constant 0 : i32
    %c0_i32_1 = arith.constant 0 : i32
    return %c0_i32, %c0_i32_0 : i32, i32
  }
  func.func @transform_4(%arg0: i32) -> (i32, i32) {
    %c0_i32 = arith.constant 0 : i32
    %c0_i32_0 = arith.constant 0 : i32
    %c0_i32_1 = arith.constant 0 : i32
    return %c0_i32, %c0_i32_0 : i32, i32
  }
  func.func @transform_5(%arg0: i32) -> (i32, i32) {
    %c0_i32 = arith.constant 0 : i32
    %c0_i32_0 = arith.constant 0 : i32
    return %arg0, %c0_i32 : i32, i32
  }
}

</mosaic_0001>

<bundles_post_ra>
// kernel: tpu_custom_call.1
= control target key start
LH: loop header
LB: loop body
LE: loop exit
PB: predicated region body
PF: predicated region fallthrough
CT: control target
= control target key end

     0   :  { %10 = vsyncpa [#allocation3], 0  ;;  %s1742_s0 = inlined_call_operand.vmem [shape: f32[256,64], index: 0, kind: input, shape index: {}]   ;;  %s1743_s1 = inlined_call_operand.vmem [shape: bf16[64,256], index: 1, kind: input, shape index: {}]   ;;  %s1744_s2 = inlined_call_operand.vmem [shape: f32[1,256], index: 2, kind: input, shape index: {}]   ;;  %s1745_s3 = inlined_call_operand.vmem [shape: bf16[256,128], index: 3, kind: input, shape index: {}]   ;;  %s1746_s4 = inlined_call_operand.vmem [shape: f32[1,128], index: 4, kind: input, shape index: {}]   ;;  %s1747_s5 = inlined_call_operand.hbm [shape: f32[256,128], index: 5, kind: output, shape index: {}]  }
   0x1   :  { %12 = vsyncpa [#allocation3 + $0x1], 0  ;;  %s1323_s18 = smov 0   ;;  %s1325_s19 = smov 0  }
   0x2   :  { %s1327_s20 = smov 0   ;;  %s1329_s21 = smov 0  }
   0x3 LB: > { %s1344_s22 = sadd.s32 4294967295, %s1287_s21   ;;  %s965_s23 = sadd.s32 4294967294, %s1287_s21   ;;  %s1287_s21 = sphi %s1329_s21, %s1753_s21   ;;  %s1283_s20 = sphi %s1327_s20, %s1752_s20   ;;  %s1279_s19 = sphi %s1325_s19, %s1751_s19   ;;  %s1275_s18 = sphi %s1323_s18, %s1750_s18  }
   0x4   : > { %s1348_s24 = sadd.s32 1, %s1287_s21   ;;  %s135_s25 = sadd.s32 1, %s1283_s20 }
   0x5   : > { %s132_s26 = ssub.s32 %s1287_s21, %s1348_s24  ;;  %p145_p0 = scmp.ne.s32.totalorder %s1283_s20, %s1279_s19 }
   0x6   : > { %p133_p1 = scmp.eq.s32.totalorder %s132_s26, 0  ;;  %p146_p2 = scmp.eq.s32.totalorder %s1344_s22, 1 }
   0x7   : > { %p151_p3 = scmp.ne.s32.totalorder %s1279_s19, %s1275_s18  ;;  %p152_p4 = scmp.eq.s32.totalorder %s965_s23, 1 }
   0x8   : > { %s1359_s27 = scalar_select %p133_p1, %s1283_s20, %s135_s25  }
   0x9   : > { %p1361_p5 = por %p146_p2, %p145_p0  ;;  %p1365_p6 = por %p152_p4, %p151_p3 }
   0xa   : > { %p968_p7 = scmp.ge.s32.totalorder %s1287_s21, 1  ;;  %p191_p8 = scmp.lt.s32.totalorder %s1287_s21, 3 }
   0xc   : > { %p192_p9 = pnand %p968_p7, %p191_p8 }
   0xd   : > { %v1133_v0 = vld [vmem:[%s1743_s1 + $0x4] ss:$8 sps:$4 sm:$0xff] (!%p192_p9)   ;;  %s970_s7 = sshll.u32 (!%p192_p9), %s1344_s22, 4  ;;  %v1135_v1 = vld [vmem:[%s1743_s1] ss:$8 sps:$4 sm:$0xff] (!%p192_p9)   ;;  %v1289_v2 = vmov (!%p192_p9), 0   ;;  %v261_v49 = vlaneseq (!%p192_p9) }
   0xe   : > { %195 = sbr.rel (%p192_p9) target bundleno = 854 (0x356), region = 40  ;;  %368 = vmatprep.mubr.bf16.mxu0 (!%p192_p9), %v1289_v2  ;;  %p220_p10 = scmp.lt.s32.totalorder (!%p192_p9), %s970_s7, 31  ;;  %336 = vmatprep.subr.bf16.mxu0 (!%p192_p9), %v1133_v0  ;;  %v1136_v3 = vld [vmem:[%s1743_s1 + $0x14] ss:$8 sps:$4 sm:$0xff] (!%p192_p9)   ;;  %v1138_v4 = vld [vmem:[%s1743_s1 + $0x10] ss:$8 sps:$4 sm:$0xff] (!%p192_p9)  }
   0xf   : > { %337 = vmatpush1.bf16.msra.mxu0 (!%p192_p9), %v1135_v1  ;;  %v1139_v5 = vld [vmem:[%s1743_s1 + $0x24] ss:$8 sps:$4 sm:$0xff] (!%p192_p9)   ;;  %v1141_v7 = vld [vmem:[%s1743_s1 + $0x20] ss:$8 sps:$4 sm:$0xff] (!%p192_p9)   ;;  %v1142_v8 = vld [vmem:[%s1743_s1 + $0x34] ss:$8 sps:$4 sm:$0xff] (!%p192_p9)  }
  0x10   : > { %338 = vmatprep.subr.bf16.mxu0 (!%p192_p9), %v1136_v3  ;;  %v1145_v6 = vld [vmem:[%s1745_s3 + $0x40] sm:$0xff] (!%p192_p9)   ;;  %v1144_v9 = vld [vmem:[%s1743_s1 + $0x30] ss:$8 sps:$4 sm:$0xff] (!%p192_p9)   ;;  %v1147_v13 = vld [vmem:[%s1745_s3 + $0x48] sm:$0xff] (!%p192_p9)   ;;  %vm311_vm0 = vcmask (!%p192_p9), 523264   ;;  %v262_v50 = vshrl.u32 (!%p192_p9), %v261_v49, 7 }
  0x11   : > { %1075 = vmatprep.subr.bf16.mxu1 (!%p192_p9), %v1145_v6  ;;  %v1146_v12 = vld [vmem:[%s1745_s3] sm:$0xff] (!%p192_p9)   ;;  %v1148_v15 = vld [vmem:[%s1745_s3 + $0x8] sm:$0xff] (!%p192_p9)   ;;  %v1149_v17 = vld [vmem:[%s1745_s3 + $0x50] sm:$0xff] (!%p192_p9)   ;;  %s216_s15 = sand.u32 (!%p192_p9), 1, %s1279_s19   ;;  %s1010_s23 = sshll.u32 (!%p192_p9), %s1344_s22, 11 }
  0x12   : > { %1083 = vmatpush3.bf16.msra.mxu1 (!%p192_p9), %v1146_v12  ;;  %v1150_v19 = vld [vmem:[%s1745_s3 + $0x10] sm:$0xff] (!%p192_p9)   ;;  %v1151_v20 = vld [vmem:[%s1745_s3 + $0x58] sm:$0xff] (!%p192_p9)   ;;  %v1153_v23 = vld [vmem:[%s1745_s3 + $0x60] sm:$0xff] (!%p192_p9)   ;;  %v263_v51 = vsub.s32 (!%p192_p9), 0, %v262_v50  ;;  %v267_v53 = vsub.s32 (!%p192_p9), 1, %v262_v50  ;;  %s1692_s6 = scalar_lea.hbm (!%p192_p9), %s1747_s5, %s1010_s23  ;;  %s1701_s22 = scalar_lea.sflag (!%p192_p9), [#allocation3], %s216_s15 }
  0x13   : > { %339 = vmatpush1.bf16.msra.mxu0 (!%p192_p9), %v1138_v4  ;;  %1076 = vmatprep.subr.bf16.mxu1 (!%p192_p9), %v1147_v13  ;;  %v1152_v22 = vld [vmem:[%s1745_s3 + $0x18] sm:$0xff] (!%p192_p9)   ;;  %v1154_v26 = vld [vmem:[%s1745_s3 + $0x20] sm:$0xff] (!%p192_p9)   ;;  %v1155_v27 = vld [vmem:[%s1745_s3 + $0x68] sm:$0xff] (!%p192_p9)   ;;  %s1290_s8 = smov (!%p192_p9), [#allocation2]  }
  0x14   : > { %340 = vmatprep.subr.bf16.mxu0 (!%p192_p9), %v1139_v5  ;;  %v1156_v44 = vld [vmem:[%s1745_s3 + $0x28] sm:$0xff] (!%p192_p9)   ;;  %v1157_v45 = vld [vmem:[%s1745_s3 + $0x70] sm:$0xff] (!%p192_p9)   ;;  %v1159_v47 = vld [vmem:[%s1745_s3 + $0x78] sm:$0xff] (!%p192_p9)   ;;  %s1229_s9 = sshll.u32 (!%p192_p9), %s1290_s8, 4  ;;  %s1230_s9 = int_to_ptr.vmem [resolvable:$false] %s1229_s9 }
  0x15   : > { %s1755_s7 = smov (!%p220_p10, %s970_s7), 31  ;;  %v1158_v46 = vld [vmem:[%s1745_s3 + $0x30] sm:$0xff]   ;;  %v1160_v48 = vld [vmem:[%s1745_s3 + $0x38] sm:$0xff]   ;;  %v259_v52 = vld [vmem:[%s1744_s2] sm:$0x3] }
  0x16   : > { %s971_s16 = sshll.u32 %s1755_s7, 3  ;;  %1084 = vmatpush3.bf16.msra.mxu1 %v1148_v15  ;;  %v1484_v54 = vrot.slane %v259_v52, %v263_v51  ;;  %v1486_v55 = vrot.slane %v259_v52, %v267_v53  ;;  %s1231_s7 = scalar_lea.vmem %s1230_s9, 4096 }
  0x17   : > { %s1400_s10 = scalar_lea.vmem %s1742_s0, %s971_s16  ;;  %341 = vmatpush1.bf16.msra.mxu0 %v1141_v7  ;;  %1077 = vmatprep.subr.bf16.mxu1 %v1149_v17  ;;  %s969_s16 = sshll.u32 %s216_s15, 7 }
  0x18   : > { %v227_v10 = vld [vmem:[%s1400_s10] sm:$0xff]  ;;  %v228_v11 = vld [vmem:[%s1400_s10 + $0x8] sm:$0xff]  ;;  %342 = vmatprep.subr.bf16.mxu0 %v1142_v8  ;;  %v229_v16 = vld [vmem:[%s1400_s10 + $0x10] sm:$0xff]  ;;  %s1657_s17 = scalar_lea.vmem [#allocation2], %s969_s16 }
  0x19   : > { %v243_v14 = vpack.c.bf16 %v228_v11, %v227_v10  ;;  %v230_v18 = vld [vmem:[%s1400_s10 + $0x18] sm:$0xff]  ;;  %v231_v24 = vld [vmem:[%s1400_s10 + $0x20] sm:$0xff]  ;;  %v232_v25 = vld [vmem:[%s1400_s10 + $0x28] sm:$0xff]  ;;  %s903_s25 = sshll.u32 %s1657_s17, 4  ;;  %s1694_s25 = int_to_ptr.vmem [resolvable:$true] %s903_s25 }
  0x1a   : > { %v244_v21 = vpack.c.bf16 %v230_v18, %v229_v16  ;;  %1085 = vmatpush3.bf16.msra.mxu1 %v1150_v19  ;;  %v245_v28 = vpack.c.bf16 %v232_v25, %v231_v24  ;;  %v233_v29 = vld [vmem:[%s1400_s10 + $0x30] sm:$0xff]  ;;  %v234_v30 = vld [vmem:[%s1400_s10 + $0x38] sm:$0xff]  ;;  %v235_v32 = vld [vmem:[%s1400_s10 + $0x40] sm:$0xff]  ;;  %p1232_p0 = scmp.lt.s32.totalorder %s1694_s25, %s1230_s9 }
  0x1b   : > { %343 = vmatpush1.bf16.msra.mxu0 %v1144_v9  ;;  %1078 = vmatprep.subr.bf16.mxu1 %v1151_v20  ;;  %v246_v31 = vpack.c.bf16 %v234_v30, %v233_v29  ;;  %v236_v33 = vld [vmem:[%s1400_s10 + $0x48] sm:$0xff]  ;;  %v237_v35 = vld [vmem:[%s1400_s10 + $0x50] sm:$0xff]  ;;  %v238_v36 = vld [vmem:[%s1400_s10 + $0x58] sm:$0xff] }
  0x1c   : > { %1011 = vmatprep.subr.bf16.mxu0 %v1145_v6  ;;  %v247_v34 = vpack.c.bf16 %v236_v33, %v235_v32  ;;  %v248_v37 = vpack.c.bf16 %v238_v36, %v237_v35  ;;  %v239_v38 = vld [vmem:[%s1400_s10 + $0x60] sm:$0xff]  ;;  %v240_v39 = vld [vmem:[%s1400_s10 + $0x68] sm:$0xff]  ;;  %v241_v41 = vld [vmem:[%s1400_s10 + $0x70] sm:$0xff] }
  0x1d   : > { %v249_v40 = vpack.c.bf16 %v240_v39, %v239_v38  ;;  %v242_v42 = vld [vmem:[%s1400_s10 + $0x78] sm:$0xff]  ;;  %s1225_s10 = scalar_lea.vmem %s1694_s25, 2048 }
  0x1e   : > { %980 = vmatmul.mubr.msk.bf16.vlgmr.msra.gmra.mrb[0].mxu0 %vm311_vm0, %v243_v14  ;;  %1086 = vmatpush3.bf16.msra.mxu1 %v1152_v22  ;;  %v250_v43 = vpack.c.bf16 %v242_v42, %v241_v41  ;;  %p1226_p11 = scmp.ne.s32.totalorder %s1694_s25, %s1225_s10  ;;  %p1233_p1 = scmp.lt.s32.totalorder %s1231_s7, %s1225_s10 }
  0x1f   : > { %378 = vmatprep.mubr.bf16.mxu0 %v1289_v2  ;;  %1012 = vmatpush3.bf16.msra.mxu0 %v1146_v12 }
  0x20   : > { %1013 = vmatprep.subr.bf16.mxu0 %v1147_v13  ;;  %1079 = vmatprep.subr.bf16.mxu1 %v1153_v23  ;;  %p1227_p12 = pnand %p1226_p11, %p1361_p5  ;;  %p1234_p2 = por %p1233_p1, %p1232_p0 }
  0x22   : > { %1087 = vmatpush3.bf16.msra.mxu1 %v1154_v26  ;;  %p1228_p13 = pneg %p1227_p12 }
  0x23   : > { %1014 = vmatpush3.bf16.msra.mxu0 %v1148_v15  ;;  %1080 = vmatprep.subr.bf16.mxu1 %v1155_v27 }
  0x24   : > { %1015 = vmatprep.subr.bf16.mxu0 %v1149_v17  ;;  %p1235_p3 = pnand %p1234_p2, %p1228_p13 }
  0x26   : > { %981 = vmatmul.mubr.msk.bf16.gmra.mrb[4].mxu0 %vm311_vm0, %v244_v21  ;;  %1088 = vmatpush3.bf16.msra.mxu1 %v1156_v44 }
  0x27   : > { %388 = vmatprep.mubr.bf16.mxu0 %v1289_v2  ;;  %1016 = vmatpush3.bf16.msra.mxu0 %v1150_v19 }
  0x28   : > { %1017 = vmatprep.subr.bf16.mxu0 %v1151_v20  ;;  %1081 = vmatprep.subr.bf16.mxu1 %v1157_v45 }
  0x2a   : > { %1089 = vmatpush3.bf16.msra.mxu1 %v1158_v46 }
  0x2b   : > { %1018 = vmatpush3.bf16.msra.mxu0 %v1152_v22  ;;  %1082 = vmatprep.subr.bf16.mxu1 %v1159_v47 }
  0x2c   : > { %1019 = vmatprep.subr.bf16.mxu0 %v1153_v23 }
  0x2e   : > { %982 = vmatmul.mubr.msk.bf16.gmra.mrb[8].mxu0 %vm311_vm0, %v245_v28  ;;  %1090 = vmatpush3.bf16.msra.mxu1 %v1160_v48 }
  0x2f   : > { %398 = vmatprep.mubr.bf16.mxu0 %v1289_v2  ;;  %1020 = vmatpush3.bf16.msra.mxu0 %v1154_v26 }
  0x30   : > { %1021 = vmatprep.subr.bf16.mxu0 %v1155_v27 }
  0x33   : > { %1022 = vmatpush3.bf16.msra.mxu0 %v1156_v44 }
  0x34   : > { %1023 = vmatprep.subr.bf16.mxu0 %v1157_v45 }
  0x36   : > { %983 = vmatmul.mubr.msk.bf16.gmra.mrb[12].mxu0 %vm311_vm0, %v246_v31 }
  0x37   : > { %408 = vmatprep.mubr.bf16.mxu0 %v1289_v2  ;;  %1024 = vmatpush3.bf16.msra.mxu0 %v1158_v46 }
  0x38   : > { %1025 = vmatprep.subr.bf16.mxu0 %v1159_v47 }
  0x3b   : > { %1026 = vmatpush3.bf16.msra.mxu0 %v1160_v48 }
  0x3e   : > { %984 = vmatmul.mubr.msk.bf16.gmra.mrb[16].mxu0 %vm311_vm0, %v247_v34 }
  0x3f   : > { %418 = vmatprep.mubr.bf16.mxu0 %v1289_v2 }
  0x46   : > { %985 = vmatmul.mubr.msk.bf16.gmra.mrb[20].mxu0 %vm311_vm0, %v248_v37 }
  0x47   : > { %428 = vmatprep.mubr.bf16.mxu0 %v1289_v2 }
  0x4e   : > { %986 = vmatmul.mubr.msk.bf16.gmra.mrb[24].mxu0 %vm311_vm0, %v249_v40 }
  0x4f   : > { %438 = vmatprep.mubr.bf16.mxu0 %v1289_v2 }
  0x56   : > { %987 = vmatmul.mubr.msk.bf16.gmra.mrb[28].mxu0 %vm311_vm0, %v250_v43 }
  0xf1   : > { %v370_v56 = vpop.f32.mrb[0].mxu0 }
  0xf2   : > { %v371_v57 = vadd.f32 %v370_v56, %v1484_v54  ;;  %v372_v58 = vpop.f32.mrb[1].mxu0 }
  0xf3   : > { %v373_v59 = vadd.f32 %v372_v58, %v1486_v55  ;;  %v374_v60 = vpop.f32.mrb[2].mxu0 }
  0xf4   : > { %v375_v61 = vadd.f32 %v374_v60, %v1484_v54  ;;  %v376_v62 = vpop.f32.mrb[3].mxu0  ;;  %v449_v0 = vmax.f32 %v371_v57, 0.0 }
  0xf5   : > { %v377_v63 = vadd.f32 %v376_v62, %v1486_v55  ;;  %v450_v2 = vmax.f32 %v373_v59, 0.0 }
  0xf6   : > { %v451_v1 = vmax.f32 %v375_v61, 0.0 }
  0xf7   : > { %v452_v3 = vmax.f32 %v377_v63, 0.0 }
  0xf8   : > { %v481_v4 = vpack.c.bf16 %v451_v1, %v449_v0 }
  0xf9   : > { %v482_v5 = vpack.c.bf16 %v452_v3, %v450_v2  ;;  %v380_v6 = vpop.f32.mrb[4].mxu0 }
  0xfa   : > { %v381_v7 = vadd.f32 %v380_v6, %v1484_v54  ;;  %v382_v8 = vpop.f32.mrb[5].mxu0 }
  0xfb   : > { %v383_v9 = vadd.f32 %v382_v8, %v1486_v55  ;;  %v384_v10 = vpop.f32.mrb[6].mxu0  ;;  %664 = vmatprep.mubr.bf16.mxu0 %v482_v5 }
  0xfc   : > { %v385_v11 = vadd.f32 %v384_v10, %v1484_v54  ;;  %v386_v12 = vpop.f32.mrb[7].mxu0  ;;  %665 = vmatmul.mubr.bf16.vlgmr.msra.gmra.mrb[32].mxu0 %v481_v4  ;;  %v453_v14 = vmax.f32 %v381_v7, 0.0 }
  0xfd   : > { %v387_v13 = vadd.f32 %v386_v12, %v1486_v55  ;;  %v454_v16 = vmax.f32 %v383_v9, 0.0 }
  0xfe   : > { %v455_v15 = vmax.f32 %v385_v11, 0.0 }
  0xff   : > { %v456_v17 = vmax.f32 %v387_v13, 0.0 }
 0x100   : > { %v483_v18 = vpack.c.bf16 %v455_v15, %v453_v14 }
 0x101   : > { %v390_v19 = vpop.f32.mrb[8].mxu0  ;;  %v484_v20 = vpack.c.bf16 %v456_v17, %v454_v16 }
 0x102   : > { %v391_v21 = vadd.f32 %v390_v19, %v1484_v54  ;;  %v392_v22 = vpop.f32.mrb[9].mxu0 }
 0x103   : > { %v393_v23 = vadd.f32 %v392_v22, %v1486_v55  ;;  %v394_v24 = vpop.f32.mrb[10].mxu0  ;;  %672 = vmatprep.mubr.bf16.mxu1 %v484_v20 }
 0x104   : > { %v395_v25 = vadd.f32 %v394_v24, %v1484_v54  ;;  %v396_v26 = vpop.f32.mrb[11].mxu0  ;;  %673 = vmatmul.mubr.bf16.vlgmr.msra.gmra.mrb[0].mxu1 %v483_v18  ;;  %v457_v28 = vmax.f32 %v391_v21, 0.0 }
 0x105   : > { %v397_v27 = vadd.f32 %v396_v26, %v1486_v55  ;;  %v458_v30 = vmax.f32 %v393_v23, 0.0 }
 0x106   : > { %v459_v29 = vmax.f32 %v395_v25, 0.0 }
 0x107   : > { %v460_v31 = vmax.f32 %v397_v27, 0.0 }
 0x108   : > { %v485_v32 = vpack.c.bf16 %v459_v29, %v457_v28 }
 0x109   : > { %v486_v33 = vpack.c.bf16 %v460_v31, %v458_v30  ;;  %v400_v34 = vpop.f32.mrb[12].mxu0 }
 0x10a   : > { %v401_v35 = vadd.f32 %v400_v34, %v1484_v54  ;;  %v402_v36 = vpop.f32.mrb[13].mxu0 }
 0x10b   : > { %v403_v37 = vadd.f32 %v402_v36, %v1486_v55  ;;  %v404_v38 = vpop.f32.mrb[14].mxu0  ;;  %680 = vmatprep.mubr.bf16.mxu1 %v486_v33 }
 0x10c   : > { %v405_v39 = vadd.f32 %v404_v38, %v1484_v54  ;;  %v406_v40 = vpop.f32.mrb[15].mxu0  ;;  %681 = vmatmul.mubr.bf16.gmra.mrb[4].mxu1 %v485_v32  ;;  %v461_v42 = vmax.f32 %v401_v35, 0.0 }
 0x10d   : > { %v407_v41 = vadd.f32 %v406_v40, %v1486_v55  ;;  %v462_v44 = vmax.f32 %v403_v37, 0.0 }
 0x10e   : > { %v463_v43 = vmax.f32 %v405_v39, 0.0 }
 0x10f   : > { %v464_v45 = vmax.f32 %v407_v41, 0.0 }
 0x110   : > { %v487_v46 = vpack.c.bf16 %v463_v43, %v461_v42 }
 0x111   : > { %v488_v47 = vpack.c.bf16 %v464_v45, %v462_v44  ;;  %v410_v48 = vpop.f32.mrb[16].mxu0  ;;  %v1523_v44 = vld [vmem:[%s1746_s4] ss:$0 sm:$0xff] }
 0x112   : > { %v411_v49 = vadd.f32 %v410_v48, %v1484_v54  ;;  %v412_v50 = vpop.f32.mrb[17].mxu0 }
 0x113   : > { %v413_v51 = vadd.f32 %v412_v50, %v1486_v55  ;;  %v414_v52 = vpop.f32.mrb[18].mxu0  ;;  %688 = vmatprep.mubr.bf16.mxu1 %v488_v47 }
 0x114   : > { %v415_v53 = vadd.f32 %v414_v52, %v1484_v54  ;;  %v416_v56 = vpop.f32.mrb[19].mxu0  ;;  %689 = vmatmul.mubr.bf16.gmra.mrb[8].mxu1 %v487_v46  ;;  %v465_v58 = vmax.f32 %v411_v49, 0.0 }
 0x115   : > { %v417_v57 = vadd.f32 %v416_v56, %v1486_v55  ;;  %v466_v60 = vmax.f32 %v413_v51, 0.0 }
 0x116   : > { %v467_v59 = vmax.f32 %v415_v53, 0.0 }
 0x117   : > { %v468_v61 = vmax.f32 %v417_v57, 0.0 }
 0x118   : > { %v489_v62 = vpack.c.bf16 %v467_v59, %v465_v58 }
 0x119   : > { %v490_v63 = vpack.c.bf16 %v468_v61, %v466_v60  ;;  %v420_v0 = vpop.f32.mrb[20].mxu0 }
 0x11a   : > { %v421_v1 = vadd.f32 %v420_v0, %v1484_v54  ;;  %v422_v2 = vpop.f32.mrb[21].mxu0 }
 0x11b   : > { %v423_v3 = vadd.f32 %v422_v2, %v1486_v55  ;;  %v424_v4 = vpop.f32.mrb[22].mxu0  ;;  %696 = vmatprep.mubr.bf16.mxu1 %v490_v63 }
 0x11c   : > { %v425_v5 = vadd.f32 %v424_v4, %v1484_v54  ;;  %v426_v6 = vpop.f32.mrb[23].mxu0  ;;  %697 = vmatmul.mubr.bf16.gmra.mrb[12].mxu1 %v489_v62  ;;  %v469_v8 = vmax.f32 %v421_v1, 0.0 }
 0x11d   : > { %v427_v7 = vadd.f32 %v426_v6, %v1486_v55  ;;  %v470_v10 = vmax.f32 %v423_v3, 0.0 }
 0x11e   : > { %v471_v9 = vmax.f32 %v425_v5, 0.0 }
 0x11f   : > { %v472_v11 = vmax.f32 %v427_v7, 0.0 }
 0x120   : > { %v491_v12 = vpack.c.bf16 %v471_v9, %v469_v8 }
 0x121   : > { %v492_v13 = vpack.c.bf16 %v472_v11, %v470_v10  ;;  %v430_v14 = vpop.f32.mrb[24].mxu0 }
 0x122   : > { %v431_v15 = vadd.f32 %v430_v14, %v1484_v54  ;;  %v432_v16 = vpop.f32.mrb[25].mxu0 }
 0x123   : > { %v433_v17 = vadd.f32 %v432_v16, %v1486_v55  ;;  %v434_v18 = vpop.f32.mrb[26].mxu0  ;;  %704 = vmatprep.mubr.bf16.mxu1 %v492_v13 }
 0x124   : > { %v435_v19 = vadd.f32 %v434_v18, %v1484_v54  ;;  %v436_v20 = vpop.f32.mrb[27].mxu0  ;;  %705 = vmatmul.mubr.bf16.gmra.mrb[16].mxu1 %v491_v12  ;;  %v473_v22 = vmax.f32 %v431_v15, 0.0 }
 0x125   : > { %v437_v21 = vadd.f32 %v436_v20, %v1486_v55  ;;  %v474_v24 = vmax.f32 %v433_v17, 0.0 }
 0x126   : > { %v475_v23 = vmax.f32 %v435_v19, 0.0 }
 0x127   : > { %v476_v25 = vmax.f32 %v437_v21, 0.0 }
 0x128   : > { %v493_v26 = vpack.c.bf16 %v475_v23, %v473_v22 }
 0x129   : > { %v494_v27 = vpack.c.bf16 %v476_v25, %v474_v24  ;;  %v440_v28 = vpop.f32.mrb[28].mxu0 }
 0x12a   : > { %v441_v29 = vadd.f32 %v440_v28, %v1484_v54  ;;  %v442_v30 = vpop.f32.mrb[29].mxu0 }
 0x12b   : > { %v443_v31 = vadd.f32 %v442_v30, %v1486_v55  ;;  %v444_v32 = vpop.f32.mrb[30].mxu0  ;;  %712 = vmatprep.mubr.bf16.mxu1 %v494_v27 }
 0x12c   : > { %v445_v33 = vadd.f32 %v444_v32, %v1484_v54  ;;  %v446_v34 = vpop.f32.mrb[31].mxu0  ;;  %713 = vmatmul.mubr.bf16.gmra.mrb[20].mxu1 %v493_v26  ;;  %v477_v36 = vmax.f32 %v441_v29, 0.0 }
 0x12d   : > { %v447_v35 = vadd.f32 %v446_v34, %v1486_v55  ;;  %v478_v38 = vmax.f32 %v443_v31, 0.0 }
 0x12e   : > { %v479_v37 = vmax.f32 %v445_v33, 0.0 }
 0x12f   : > { %v480_v39 = vmax.f32 %v447_v35, 0.0 }
 0x130   : > { %v495_v40 = vpack.c.bf16 %v479_v37, %v477_v36 }
 0x131   : > { %v496_v41 = vpack.c.bf16 %v480_v39, %v478_v38 }
 0x133   : > { %720 = vmatprep.mubr.bf16.mxu1 %v496_v41 }
 0x134   : > { %721 = vmatmul.mubr.bf16.gmra.mrb[24].mxu1 %v495_v40 }
 0x1cf   : > { %v1027_v42 = vpop.f32.mrb[32].mxu0 }
 0x1d0   : > { %v1028_v43 = vpop.f32.mrb[33].mxu0 }
 0x1d1   : > { %v1029_v54 = vadd.f32 %v1028_v43, %v1027_v42  ;;  %v1030_v45 = vpop.f32.mrb[34].mxu0 }
 0x1d2   : > { %v1031_v46 = vpop.f32.mrb[35].mxu0 }
 0x1d3   : > { %v1032_v47 = vadd.f32 %v1031_v46, %v1030_v45  ;;  %v1526_v55 = vadd.f32 %v1029_v54, %v1523_v44 }
 0x1d5   : > { %729 = vmax.xlane.f32.xlu0 %v1526_v55  ;;  %v1530_v49 = vadd.f32 %v1032_v47, %v1523_v44 }
 0x1d7   : > { %v1033_v48 = vpop.f32.mrb[0].mxu1 }
 0x1d8   : > { %v1034_v50 = vpop.f32.mrb[1].mxu1 }
 0x1d9   : > { %v1035_v51 = vadd.f32 %v1034_v50, %v1033_v48  ;;  %v1036_v52 = vpop.f32.mrb[2].mxu1  ;;  %731 = vmax.xlane.f32.xlu0 %v1530_v49 }
 0x1da   : > { %v1037_v53 = vpop.f32.mrb[3].mxu1 }
 0x1db   : > { %v1038_v56 = vadd.f32 %v1037_v53, %v1036_v52  ;;  %v1534_v57 = vadd.f32 %v1035_v51, %v1523_v44 }
 0x1dd   : > { %733 = vmax.xlane.f32.xlu1 %v1534_v57  ;;  %v1538_v59 = vadd.f32 %v1038_v56, %v1523_v44 }
 0x1df   : > { %v1039_v58 = vpop.f32.mrb[4].mxu1 }
 0x1e0   : > { %v1040_v60 = vpop.f32.mrb[5].mxu1 }
 0x1e1   : > { %v1041_v61 = vadd.f32 %v1040_v60, %v1039_v58  ;;  %v1042_v62 = vpop.f32.mrb[6].mxu1  ;;  %735 = vmax.xlane.f32.xlu1 %v1538_v59 }
 0x1e2   : > { %v1043_v63 = vpop.f32.mrb[7].mxu1 }
 0x1e3   : > { %v1044_v0 = vadd.f32 %v1043_v63, %v1042_v62  ;;  %v1542_v1 = vadd.f32 %v1041_v61, %v1523_v44 }
 0x1e5   : > { %737 = vmax.xlane.f32.xlu0 %v1542_v1  ;;  %v1546_v2 = vadd.f32 %v1044_v0, %v1523_v44 }
 0x1e7   : > { %v1045_v3 = vpop.f32.mrb[8].mxu1  ;;  %739 = vmax.xlane.f32.xlu1 %v1546_v2 }
 0x1e8   : > { %v1046_v4 = vpop.f32.mrb[9].mxu1 }
 0x1e9   : > { %v1047_v5 = vadd.f32 %v1046_v4, %v1045_v3  ;;  %v1048_v6 = vpop.f32.mrb[10].mxu1 }
 0x1ea   : > { %v1049_v7 = vpop.f32.mrb[11].mxu1 }
 0x1eb   : > { %v1050_v8 = vadd.f32 %v1049_v7, %v1048_v6  ;;  %v1550_v9 = vadd.f32 %v1047_v5, %v1523_v44 }
 0x1ed   : > { %741 = vmax.xlane.f32.xlu0 %v1550_v9  ;;  %v1554_v10 = vadd.f32 %v1050_v8, %v1523_v44 }
 0x1ef   : > { %v1051_v11 = vpop.f32.mrb[12].mxu1  ;;  %743 = vmax.xlane.f32.xlu1 %v1554_v10 }
 0x1f0   : > { %v1052_v12 = vpop.f32.mrb[13].mxu1 }
 0x1f1   : > { %v1053_v13 = vadd.f32 %v1052_v12, %v1051_v11  ;;  %v1054_v14 = vpop.f32.mrb[14].mxu1 }
 0x1f2   : > { %v1055_v15 = vpop.f32.mrb[15].mxu1 }
 0x1f3   : > { %v1056_v16 = vadd.f32 %v1055_v15, %v1054_v14  ;;  %v1558_v17 = vadd.f32 %v1053_v13, %v1523_v44 }
 0x1f5   : > { %745 = vmax.xlane.f32.xlu0 %v1558_v17  ;;  %v1562_v18 = vadd.f32 %v1056_v16, %v1523_v44 }
 0x1f7   : > { %v1057_v19 = vpop.f32.mrb[16].mxu1  ;;  %747 = vmax.xlane.f32.xlu1 %v1562_v18 }
 0x1f8   : > { %v1058_v20 = vpop.f32.mrb[17].mxu1 }
 0x1f9   : > { %v1059_v21 = vadd.f32 %v1058_v20, %v1057_v19  ;;  %v1060_v22 = vpop.f32.mrb[18].mxu1 }
 0x1fa   : > { %v1061_v23 = vpop.f32.mrb[19].mxu1 }
 0x1fb   : > { %v1062_v24 = vadd.f32 %v1061_v23, %v1060_v22  ;;  %v1566_v25 = vadd.f32 %v1059_v21, %v1523_v44 }
 0x1fd   : > { %749 = vmax.xlane.f32.xlu0 %v1566_v25  ;;  %v1570_v26 = vadd.f32 %v1062_v24, %v1523_v44 }
 0x1ff   : > { %v1063_v27 = vpop.f32.mrb[20].mxu1  ;;  %751 = vmax.xlane.f32.xlu1 %v1570_v26 }
 0x200   : > { %v1064_v28 = vpop.f32.mrb[21].mxu1 }
 0x201   : > { %v1065_v29 = vadd.f32 %v1064_v28, %v1063_v27  ;;  %v1066_v30 = vpop.f32.mrb[22].mxu1 }
 0x202   : > { %v1067_v31 = vpop.f32.mrb[23].mxu1 }
 0x203   : > { %v1068_v32 = vadd.f32 %v1067_v31, %v1066_v30  ;;  %v1574_v33 = vadd.f32 %v1065_v29, %v1523_v44 }
 0x205   : > { %753 = vmax.xlane.f32.xlu0 %v1574_v33  ;;  %v1578_v34 = vadd.f32 %v1068_v32, %v1523_v44 }
 0x207   : > { %v1069_v35 = vpop.f32.mrb[24].mxu1  ;;  %755 = vmax.xlane.f32.xlu1 %v1578_v34 }
 0x208   : > { %v1070_v36 = vpop.f32.mrb[25].mxu1 }
 0x209   : > { %v1071_v37 = vadd.f32 %v1070_v36, %v1069_v35  ;;  %v1072_v38 = vpop.f32.mrb[26].mxu1 }
 0x20a   : > { %v1073_v39 = vpop.f32.mrb[27].mxu1 }
 0x20b   : > { %v1074_v40 = vadd.f32 %v1073_v39, %v1072_v38  ;;  %v1582_v41 = vadd.f32 %v1071_v37, %v1523_v44 }
 0x20d   : > { %757 = vmax.xlane.f32.xlu0 %v1582_v41  ;;  %v1586_v42 = vadd.f32 %v1074_v40, %v1523_v44 }
 0x20f   : > { %759 = vmax.xlane.f32.xlu1 %v1586_v42 }
 0x262   : > { %v730_v43 = vpop.xlane.xlu0 %729 }
 0x263   : > { %v761_v54 = vsub.f32 %v1526_v55, %v730_v43 }
 0x265   : > { %v777_v45 = vmul.f32 1.442695, %v761_v54 }
 0x266   : > { %v732_v46 = vpop.xlane.xlu0 %731 }
 0x267   : > { %1161 = vpow2.f32 %v777_v45  ;;  %v762_v47 = vsub.f32 %v1530_v49, %v732_v46 }
 0x269   : > { %v779_v48 = vmul.f32 1.442695, %v762_v47 }
 0x26a   : > { %v734_v50 = vpop.xlane.xlu1 %733 }
 0x26b   : > { %1163 = vpow2.f32 %v779_v48  ;;  %v763_v51 = vsub.f32 %v1534_v57, %v734_v50 }
 0x26d   : > { %v781_v52 = vmul.f32 1.442695, %v763_v51 }
 0x26e   : > { %v736_v53 = vpop.xlane.xlu1 %735 }
 0x26f   : > { %1165 = vpow2.f32 %v781_v52  ;;  %v764_v44 = vsub.f32 %v1538_v59, %v736_v53 }
 0x271   : > { %v1593_v56 = vpop.eup %1161  ;;  %v783_v58 = vmul.f32 1.442695, %v764_v44 }
 0x272   : > { %809 = vadd.xlane.f32.xlu0 %v1593_v56  ;;  %v738_v55 = vpop.xlane.xlu0 %737 }
 0x273   : > { %1167 = vpow2.f32 %v783_v58  ;;  %v765_v60 = vsub.f32 %v1542_v1, %v738_v55 }
 0x274   : > { %v740_v49 = vpop.xlane.xlu1 %739 }
 0x275   : > { %v1597_v61 = vpop.eup %1163  ;;  %v785_v62 = vmul.f32 1.442695, %v765_v60  ;;  %v766_v57 = vsub.f32 %v1546_v2, %v740_v49 }
 0x276   : > { %811 = vadd.xlane.f32.xlu1 %v1597_v61 }
 0x277   : > { %1169 = vpow2.f32 %v785_v62  ;;  %v787_v63 = vmul.f32 1.442695, %v766_v57 }
 0x279   : > { %v1601_v59 = vpop.eup %1165  ;;  %1171 = vpow2.f32 %v787_v63 }
 0x27a   : > { %813 = vadd.xlane.f32.xlu0 %v1601_v59  ;;  %v742_v0 = vpop.xlane.xlu0 %741 }
 0x27b   : > { %v767_v3 = vsub.f32 %v1550_v9, %v742_v0 }
 0x27c   : > { %v744_v4 = vpop.xlane.xlu1 %743 }
 0x27d   : > { %v1605_v1 = vpop.eup %1167  ;;  %v789_v5 = vmul.f32 1.442695, %v767_v3  ;;  %v768_v6 = vsub.f32 %v1554_v10, %v744_v4 }
 0x27e   : > { %815 = vadd.xlane.f32.xlu1 %v1605_v1 }
 0x27f   : > { %1173 = vpow2.f32 %v789_v5  ;;  %v791_v2 = vmul.f32 1.442695, %v768_v6 }
 0x281   : > { %v1609_v7 = vpop.eup %1169  ;;  %1175 = vpow2.f32 %v791_v2 }
 0x282   : > { %817 = vadd.xlane.f32.xlu0 %v1609_v7  ;;  %v746_v8 = vpop.xlane.xlu0 %745 }
 0x283   : > { %v1612_v11 = vpop.eup %1171  ;;  %v769_v9 = vsub.f32 %v1558_v17, %v746_v8 }
 0x284   : > { %v748_v12 = vpop.xlane.xlu1 %747  ;;  %819 = vadd.xlane.f32.xlu1 %v1612_v11 }
 0x285   : > { %v793_v13 = vmul.f32 1.442695, %v769_v9  ;;  %v770_v10 = vsub.f32 %v1562_v18, %v748_v12 }
 0x287   : > { %1177 = vpow2.f32 %v793_v13  ;;  %v795_v14 = vmul.f32 1.442695, %v770_v10 }
 0x289   : > { %v1617_v15 = vpop.eup %1173  ;;  %1179 = vpow2.f32 %v795_v14 }
 0x28a   : > { %821 = vadd.xlane.f32.xlu0 %v1617_v15  ;;  %v750_v16 = vpop.xlane.xlu0 %749 }
 0x28b   : > { %v1620_v19 = vpop.eup %1175  ;;  %v771_v20 = vsub.f32 %v1566_v25, %v750_v16 }
 0x28c   : > { %v752_v21 = vpop.xlane.xlu1 %751  ;;  %823 = vadd.xlane.f32.xlu1 %v1620_v19 }
 0x28d   : > { %v797_v17 = vmul.f32 1.442695, %v771_v20  ;;  %v772_v22 = vsub.f32 %v1570_v26, %v752_v21 }
 0x28f   : > { %1181 = vpow2.f32 %v797_v17  ;;  %v799_v18 = vmul.f32 1.442695, %v772_v22 }
 0x291   : > { %v1625_v23 = vpop.eup %1177  ;;  %1183 = vpow2.f32 %v799_v18 }
 0x292   : > { %825 = vadd.xlane.f32.xlu0 %v1625_v23  ;;  %v754_v24 = vpop.xlane.xlu0 %753 }
 0x293   : > { %v1628_v27 = vpop.eup %1179  ;;  %v773_v28 = vsub.f32 %v1574_v33, %v754_v24 }
 0x294   : > { %v756_v29 = vpop.xlane.xlu1 %755  ;;  %827 = vadd.xlane.f32.xlu1 %v1628_v27 }
 0x295   : > { %v801_v25 = vmul.f32 1.442695, %v773_v28  ;;  %v774_v30 = vsub.f32 %v1578_v34, %v756_v29 }
 0x297   : > { %1185 = vpow2.f32 %v801_v25  ;;  %v803_v26 = vmul.f32 1.442695, %v774_v30 }
 0x299   : > { %v1633_v31 = vpop.eup %1181  ;;  %1187 = vpow2.f32 %v803_v26 }
 0x29a   : > { %829 = vadd.xlane.f32.xlu0 %v1633_v31  ;;  %v758_v32 = vpop.xlane.xlu0 %757 }
 0x29b   : > { %v1636_v35 = vpop.eup %1183  ;;  %v775_v36 = vsub.f32 %v1582_v41, %v758_v32 }
 0x29c   : > { %v760_v37 = vpop.xlane.xlu1 %759  ;;  %831 = vadd.xlane.f32.xlu1 %v1636_v35 }
 0x29d   : > { %v805_v33 = vmul.f32 1.442695, %v775_v36  ;;  %v776_v38 = vsub.f32 %v1586_v42, %v760_v37 }
 0x29f   : > { %1189 = vpow2.f32 %v805_v33  ;;  %v807_v34 = vmul.f32 1.442695, %v776_v38 }
 0x2a1   : > { %v1641_v39 = vpop.eup %1185  ;;  %1191 = vpow2.f32 %v807_v34 }
 0x2a2   : > { %833 = vadd.xlane.f32.xlu0 %v1641_v39 }
 0x2a3   : > { %v1644_v40 = vpop.eup %1187 }
 0x2a4   : > { %835 = vadd.xlane.f32.xlu1 %v1644_v40 }
 0x2a9   : > { %v1647_v41 = vpop.eup %1189 }
 0x2aa   : > { %837 = vadd.xlane.f32.xlu0 %v1647_v41 }
 0x2ab   : > { %v1650_v43 = vpop.eup %1191 }
 0x2ac   : > { %839 = vadd.xlane.f32.xlu1 %v1650_v43 }
 0x2ff   : > { %v810_v42 = vpop.xlane.xlu0 %809 }
 0x300   : > { %1193 = vrcp.f32 %v810_v42 }
 0x303   : > { %v812_v54 = vpop.xlane.xlu1 %811 }
 0x304   : > { %1195 = vrcp.f32 %v812_v54 }
 0x307   : > { %v814_v45 = vpop.xlane.xlu0 %813 }
 0x308   : > { %1197 = vrcp.f32 %v814_v45 }
 0x30a   : > { %v1194_v46 = vpop.eup %1193 }
 0x30b   : > { %v857_v47 = vmul.f32 %v1194_v46, %v1593_v56  ;;  %v816_v48 = vpop.xlane.xlu1 %815 }
 0x30c   : > { %1199 = vrcp.f32 %v816_v48 }
 0x30d   : > { %873 = vst [vmem:[%s1657_s17] sm:$0xff] %v857_v47 }
 0x30e   : > { %v1196_v50 = vpop.eup %1195 }
 0x30f   : > { %v858_v51 = vmul.f32 %v1196_v50, %v1597_v61  ;;  %v818_v52 = vpop.xlane.xlu0 %817 }
 0x310   : > { %1201 = vrcp.f32 %v818_v52 }
 0x311   : > { %874 = vst [vmem:[%s1657_s17 + $0x8] sm:$0xff] %v858_v51  ;;  %v820_v53 = vpop.xlane.xlu1 %819 }
 0x312   : > { %v1198_v44 = vpop.eup %1197  ;;  %1203 = vrcp.f32 %v820_v53 }
 0x313   : > { %v859_v56 = vmul.f32 %v1198_v44, %v1601_v59 }
 0x315   : > { %875 = vst [vmem:[%s1657_s17 + $0x10] sm:$0xff] %v859_v56 }
 0x316   : > { %v1200_v58 = vpop.eup %1199 }
 0x317   : > { %v860_v55 = vmul.f32 %v1200_v58, %v1605_v1  ;;  %v822_v60 = vpop.xlane.xlu0 %821 }
 0x318   : > { %1205 = vrcp.f32 %v822_v60 }
 0x319   : > { %876 = vst [vmem:[%s1657_s17 + $0x18] sm:$0xff] %v860_v55  ;;  %v824_v49 = vpop.xlane.xlu1 %823 }
 0x31a   : > { %v1202_v61 = vpop.eup %1201  ;;  %1207 = vrcp.f32 %v824_v49 }
 0x31b   : > { %v861_v62 = vmul.f32 %v1202_v61, %v1609_v7 }
 0x31c   : > { %v1204_v57 = vpop.eup %1203 }
 0x31d   : > { %877 = vst [vmem:[%s1657_s17 + $0x20] sm:$0xff] %v861_v62  ;;  %v862_v63 = vmul.f32 %v1204_v57, %v1612_v11 }
 0x31f   : > { %878 = vst [vmem:[%s1657_s17 + $0x28] sm:$0xff] %v862_v63  ;;  %v826_v59 = vpop.xlane.xlu0 %825 }
 0x320   : > { %1209 = vrcp.f32 %v826_v59 }
 0x321   : > { %v828_v0 = vpop.xlane.xlu1 %827 }
 0x322   : > { %v1206_v3 = vpop.eup %1205  ;;  %1211 = vrcp.f32 %v828_v0 }
 0x323   : > { %v863_v4 = vmul.f32 %v1206_v3, %v1617_v15 }
 0x324   : > { %v1208_v1 = vpop.eup %1207 }
 0x325   : > { %879 = vst [vmem:[%s1657_s17 + $0x30] sm:$0xff] %v863_v4  ;;  %v864_v5 = vmul.f32 %v1208_v1, %v1620_v19 }
 0x327   : > { %880 = vst [vmem:[%s1657_s17 + $0x38] sm:$0xff] %v864_v5  ;;  %v830_v6 = vpop.xlane.xlu0 %829 }
 0x328   : > { %1213 = vrcp.f32 %v830_v6 }
 0x329   : > { %v832_v2 = vpop.xlane.xlu1 %831 }
 0x32a   : > { %v1210_v7 = vpop.eup %1209  ;;  %1215 = vrcp.f32 %v832_v2 }
 0x32b   : > { %v865_v8 = vmul.f32 %v1210_v7, %v1625_v23 }
 0x32c   : > { %v1212_v11 = vpop.eup %1211 }
 0x32d   : > { %881 = vst [vmem:[%s1657_s17 + $0x40] sm:$0xff] %v865_v8  ;;  %v866_v9 = vmul.f32 %v1212_v11, %v1628_v27 }
 0x32f   : > { %882 = vst [vmem:[%s1657_s17 + $0x48] sm:$0xff] %v866_v9  ;;  %v834_v12 = vpop.xlane.xlu0 %833 }
 0x330   : > { %1217 = vrcp.f32 %v834_v12 }
 0x331   : > { %v836_v13 = vpop.xlane.xlu1 %835 }
 0x332   : > { %v1214_v10 = vpop.eup %1213  ;;  %1219 = vrcp.f32 %v836_v13 }
 0x333   : > { %v867_v14 = vmul.f32 %v1214_v10, %v1633_v31 }
 0x334   : > { %v1216_v15 = vpop.eup %1215 }
 0x335   : > { %883 = vst [vmem:[%s1657_s17 + $0x50] sm:$0xff] %v867_v14  ;;  %v868_v16 = vmul.f32 %v1216_v15, %v1636_v35 }
 0x337   : > { %884 = vst [vmem:[%s1657_s17 + $0x58] sm:$0xff] %v868_v16  ;;  %v838_v19 = vpop.xlane.xlu0 %837 }
 0x338   : > { %1221 = vrcp.f32 %v838_v19 }
 0x339   : > { %v840_v20 = vpop.xlane.xlu1 %839 }
 0x33a   : > { %v1218_v21 = vpop.eup %1217  ;;  %1223 = vrcp.f32 %v840_v20 }
 0x33b   : > { %v869_v17 = vmul.f32 %v1218_v21, %v1641_v39 }
 0x33c   : > { %v1220_v22 = vpop.eup %1219 }
 0x33d   : > { %885 = vst [vmem:[%s1657_s17 + $0x60] sm:$0xff] %v869_v17  ;;  %v870_v18 = vmul.f32 %v1220_v22, %v1644_v40 }
 0x33f   : > { %886 = vst [vmem:[%s1657_s17 + $0x68] sm:$0xff] %v870_v18 }
 0x342   : > { %v1222_v23 = vpop.eup %1221 }
 0x343   : > { %v871_v24 = vmul.f32 %v1222_v23, %v1647_v41 }
 0x344   : > { %v1224_v27 = vpop.eup %1223 }
 0x345   : > { %887 = vst [vmem:[%s1657_s17 + $0x70] sm:$0xff] %v871_v24  ;;  %v872_v28 = vmul.f32 %v1224_v27, %v1650_v43 }
 0x347   : > { %888 = vst [vmem:[%s1657_s17 + $0x78] sm:$0xff] %v872_v28 }
 0x348   : > { %1238 = shalt.err (!%p1235_p3)
}
 0x349   : > { %s1239_s11 = scalar_lea.hbm %s1692_s6, 2048  ;;  %s1243_s14 = scalar_lea.hbm %s1747_s5, 4096 }
 0x34a   : > { %p1240_p4 = scmp.ne.s32.totalorder %s1692_s6, %s1239_s11  ;;  %p1244_p9 = scmp.lt.u32.totalorder %s1692_s6, %s1747_s5 }
 0x34b   : > { %p1245_p10 = scmp.lt.u32.totalorder %s1243_s14, %s1239_s11  ;;  %p1247_p12 = scmp.lt.u32.totalorder %s1239_s11, %s1692_s6 }
 0x34c   : > { %p1241_p7 = pnand %p1240_p4, %p1361_p5 }
 0x34d   : > { %p1246_p11 = por %p1245_p10, %p1244_p9 }
 0x34e   : > { %p1242_p8 = pneg %p1241_p7 }
 0x34f   : > { %p1248_p13 = por %p1247_p12, %p1246_p11 }
 0x351   : > { %p1249_p0 = pnand %p1248_p13, %p1242_p8 }
 0x353   : > { %1252 = shalt.err (!%p1249_p0)
}
 0x354   : > { %s1291_s17 = smov 128   ;;  %s1292_s23 = smov 8  }
 0x355   : > { %1091 = dma.vmem_to_hbm [thread:$0]  (%p1361_p5), %s1694_s25, 2048, %s1692_s6, %s1701_s22, %s1291_s17, %s1291_s17, %s1292_s23  }
 0x356 PF: > { %p1097_p1 = scmp.ge.s32.totalorder %s1287_s21, 2  ;;  %s918_s26 = sand.u32 1, %s1275_s18  }
 0x357   : > { %s919_s30 = scalar_lea.sflag [#allocation3], %s918_s26 }
 0x358   : > { %p1094_p2 = pnand %p1097_p1, %p1365_p6 }
 0x35a   : > { %1270 = dma.done.wait (!%p1094_p2), %s919_s30, 2048  }
 0x35b   : > { %1272 = vsyncadd (!%p1094_p2), %s919_s30, 4294965248  ;;  %p15_p3 = scmp.ge.s32.totalorder %s1348_s24, 4   ;;  %s1750_s18 = smov %s1279_s19 }
 0x35c   : > { %s1751_s19 = smov %s1283_s20  ;;  %s1752_s20 = smov %s1359_s27 }
 0x35d   : > { %s1753_s21 = smov %s1348_s24  ;;  %17 = sbr.rel (!%p15_p3) target bundleno = 3 (0x3), region = 75 }
 0x364   :  { %924 = vsyncpa [#allocation3], 1 }
 0x365   :  { %926 = vsyncpa [#allocation3 + $0x1], 1 }

</bundles_post_ra>
